<compile_context>
chip_gen: v5e
topology: v5e:2x2
jax: 0.10.0
libtpu: 0.0.40
codegen_flags: <defaults>
</compile_context>

<pallas_src>
import functools

import jax
import jax.numpy as jnp
from jax.experimental import pallas as pl
from jax.experimental.pallas import tpu as pltpu


def _proj_kernel(x_ref, rk_ref, o_ref, *, g, ctl, tle):
    """One grid step: g independent (P, C*tl) @ (C*tl, tl*E) MXU matmuls whose
    results land directly in the final interleaved (P, L*E) layout.  All slice
    offsets are static multiples of 128 lanes -> full-width vld/vst, no masks,
    no relayouts."""
    rk = rk_ref[...]
    for i in range(g):
        o_ref[:, i * tle:(i + 1) * tle] = jnp.dot(
            x_ref[:, i * ctl:(i + 1) * ctl],
            rk,
            preferred_element_type=jnp.float32,
        ).astype(o_ref.dtype)


def _choose_blocking(L, C, E, P, in_isz, out_isz):
    """Pick (tl, g): `tl` = patches per Kronecker sub-block (fixes the matmul
    shapes, K = C*tl), `g` = sub-blocks per grid step (fixes the DMA/block
    size).  Lane dims C*tl and tl*E must be multiples of 128 (or full extent),
    the Kronecker RHS (C*E*tl^2 elems) must stay small, and each grid step
    should move ~1 MiB of output while leaving >= 2 steps when possible."""
    tl = None
    for d in range(1, L + 1):
        if L % d:
            continue
        if (C * d) % 128 == 0 and (E * d) % 128 == 0 and C * E * d * d * in_isz <= (2 << 20):
            tl = d
            break
    if tl is None:
        # Single full-extent block: always a legal BlockSpec; fine for small L.
        # TODO(synk): very large L with no 128-aligned divisor needs a padded-L path.
        if C * E * L * L * in_isz > (16 << 20):
            raise NotImplementedError(f"no 128-aligned patch-tile divisor for L={L}")
        return L, 1
    nblk = L // tl
    target = max(1, (1 << 20) // (P * tl * E * out_isz))   # ~1 MiB output / step
    divs = [d for d in range(1, nblk + 1) if nblk % d == 0 and d <= target]
    keep2 = [d for d in divs if nblk // d >= 2]             # >= 2 steps (v7x megacore)
    g = max(keep2) if keep2 else max(divs)
    return tl, g


def new_embed_forward(x, w, patch_size, *, compute_dtype=None, out_dtype=None):
    """Pallas implementation of NewEmbed.forward.

    x: (b, C, H, W) NCHW; only batch element 0 is used (matches `x = x[0]`).
    w: (embed_dim, C) 1x1-conv weight (squeezed from (E, C, 1, 1), no bias).
    Returns (p0*p1, L*embed_dim) with L = (H//p0)*(W//p0), float32 by default.
    compute_dtype / out_dtype=bf16 optionally halve the input / dominant
    output HBM streams (accumulation stays f32 on the MXU).
    """
    p0, p1 = patch_size
    if p0 != p1:
        # nn.Unfold(kernel_size=(p0,p1), stride=p0) with p0 != p1 would
        # overlap/skip columns; the module only uses square patches.
        raise NotImplementedError("p0 != p1 is not supported")
    b, C, H, W = x.shape
    E, C2 = w.shape
    assert C == C2, (w.shape, x.shape)
    lh, lw = H // p0, W // p1
    assert lh > 0 and lw > 0
    L, P = lh * lw, p0 * p1

    cmp_dt = jnp.dtype(x.dtype if compute_dtype is None else compute_dtype)
    out_dt = jnp.dtype(jnp.float32 if out_dtype is None else out_dtype)

    tl, g = _choose_blocking(L, C, E, P, cmp_dt.itemsize, out_dt.itemsize)
    nblk = L // tl
    steps = nblk // g
    ctl, tle = C * tl, tl * E

    # ---- XLA-side prep touches only the small streams (C-wide input, tiny
    # weight); the E-wide output never makes an extra HBM round trip.
    x0 = x[0, :, : lh * p0, : lw * p1]                       # batch 0 only
    xg = (
        x0.reshape(C, lh, p0, lw, p1)
        .transpose(2, 4, 0, 1, 3)                            # (p0, p1, C, lh, lw)
        .reshape(P, C, L)                                    # xg[p,c,l] = x[0,c,lr*p0+kr,lc*p1+kc]
    )
    xpre = (
        xg.reshape(P, C, nblk, tl)
        .transpose(0, 2, 1, 3)                               # (P, nblk, C, tl)
        .reshape(P, nblk * ctl)                              # lane = r*(C*tl) + c*tl + t
        .astype(cmp_dt)
    )
    # Kronecker-expanded 1x1-conv weight: rk[c*tl + t', t*E + e] = w[e,c]*(t'==t).
    w_c = w.astype(cmp_dt)
    eye = jnp.eye(tl, dtype=cmp_dt)
    rk = (w_c.T[:, None, None, :] * eye[None, :, :, None]).reshape(ctl, tle)

    # ---- VMEM accounting with the true per-stream itemsizes (v7x/v5e review).
    vmem_need = (
        2 * P * g * ctl * cmp_dt.itemsize       # double-buffered input blocks
        + 2 * ctl * tle * cmp_dt.itemsize       # resident Kronecker weight
        + 2 * P * g * tle * out_dt.itemsize     # double-buffered output blocks
    )
    vmem_limit = int(min(max(2 * vmem_need + (1 << 20), 8 << 20), 32 << 20))

    return pl.pallas_call(
        functools.partial(_proj_kernel, g=g, ctl=ctl, tle=tle),
        out_shape=jax.ShapeDtypeStruct((P, L * E), out_dt),
        grid_spec=pltpu.PrefetchScalarGridSpec(
            num_scalar_prefetch=0,
            grid=(steps,),
            in_specs=[
                pl.BlockSpec((P, g * ctl), lambda s: (0, s)),
                pl.BlockSpec((ctl, tle), lambda s: (0, 0)),   # VMEM-resident weight
            ],
            out_specs=pl.BlockSpec((P, g * tle), lambda s: (0, s)),
        ),
        compiler_params=pltpu.CompilerParams(
            dimension_semantics=("parallel",),   # shards steps across v7x's 2 TCs
            vmem_limit_bytes=vmem_limit,
        ),
    )(xpre, rk)


def _reference(x, w, p):
    """Pure-JAX reference of the torch forward."""
    _, C, H, W = x.shape
    E = w.shape[0]
    lh, lw = H // p, W // p
    L, P = lh * lw, p * p
    x0 = x[0].reshape(C, lh, p, lw, p)
    patches = jnp.transpose(x0, (1, 3, 0, 2, 4)).reshape(L, C, P)
    conv = jnp.einsum("ec,lcp->lep", w, patches,
                      precision=jax.lax.Precision.HIGHEST)    # (L, E, P)
    return jnp.transpose(conv.reshape(L * E, P), (1, 0))      # (P, L*E)


if __name__ == "__main__":
    base = jax.random.PRNGKey(0)
    b, inc, p, embed_dim = 2, 4, 4, 32
    # img=16 exercises the single full-extent block path; img=32 exercises the
    # tiled path (tl=32, K=C*tl=128, two grid steps).
    for img in (16, 32):
        kx, kw = jax.random.split(jax.random.fold_in(base, img))
        x = jax.random.normal(kx, (b, inc, img, img), dtype=jnp.float32)
        w = jax.random.normal(kw, (embed_dim, inc), dtype=jnp.float32) / jnp.sqrt(inc)

        out = jax.block_until_ready(new_embed_forward(x, w, (p, p)))
        ref = _reference(x, w, p)

        L = (img // p) ** 2
        assert out.shape == (p * p, L * embed_dim), out.shape
        assert jnp.allclose(out, ref, atol=2e-5, rtol=2e-5), (
            img, float(jnp.max(jnp.abs(out - ref))))
    print("KERNEL_OK")
</pallas_src>

<mosaic_0001>
module attributes {stable_mosaic.version = 11 : i64} {
  func.func @_proj_kernel(%arg0: i32, %arg1: memref<16x64xf32, #tpu.memory_space<vmem>>, %arg2: memref<64x512xf32, #tpu.memory_space<vmem>>, %arg3: memref<16x512xf32, #tpu.memory_space<vmem>>) attributes {dimension_semantics = [#tpu.dimension_semantics<parallel>], iteration_bounds = array<i64: 1>, scalar_prefetch = 0 : i64, scratch_operands = 0 : i64, tpu.core_type = #tpu.core_type<tc>, window_params = [{transform_indices = @transform_0, window_bounds = array<i64: 16, 64>}, {pipeline_mode = #tpu.pipeline_mode<synchronous>, transform_indices = @transform_1, window_bounds = array<i64: 64, 512>}, {transform_indices = @transform_2, window_bounds = array<i64: 16, 512>}]} {
    %c0 = arith.constant 0 : index
    %c0_0 = arith.constant 0 : index
    %0 = vector.load %arg2[%c0, %c0_0] : memref<64x512xf32, #tpu.memory_space<vmem>>, vector<64x512xf32>
    %c0_1 = arith.constant 0 : index
    %c0_2 = arith.constant 0 : index
    %1 = vector.load %arg1[%c0_1, %c0_2] : memref<16x64xf32, #tpu.memory_space<vmem>>, vector<16x64xf32>
    %cst = arith.constant dense<0.000000e+00> : vector<16x512xf32>
    %2 = tpu.matmul %1, %0, %cst {dimension_numbers = #tpu.dot_dimension_numbers<[1], [0], [0], [1], [0, 0, 1, 1], [], []>} : vector<16x64xf32>, vector<64x512xf32>, vector<16x512xf32> -> vector<16x512xf32>
    %c0_3 = arith.constant 0 : index
    %c0_4 = arith.constant 0 : index
    %3 = vector.load %arg3[%c0_3, %c0_4] : memref<16x512xf32, #tpu.memory_space<vmem>>, vector<16x512xf32>
    tpu.vector_store %arg3[%c0_3, %c0_4], %2 {strides = array<i32>} : memref<16x512xf32, #tpu.memory_space<vmem>>, vector<16x512xf32>,
    return
  }
  func.func @transform_0(%arg0: i32) -> (i32, i32) {
    %c0_i32 = arith.constant 0 : i32
    %c0_i32_0 = arith.constant 0 : i32
    return %c0_i32, %arg0 : i32, i32
  }
  func.func @transform_1(%arg0: i32) -> (i32, i32) {
    %c0_i32 = arith.constant 0 : i32
    %c0_i32_0 = arith.constant 0 : i32
    %c0_i32_1 = arith.constant 0 : i32
    return %c0_i32, %c0_i32_0 : i32, i32
  }
  func.func @transform_2(%arg0: i32) -> (i32, i32) {
    %c0_i32 = arith.constant 0 : i32
    %c0_i32_0 = arith.constant 0 : i32
    return %c0_i32, %arg0 : i32, i32
  }
}

</mosaic_0001>

<bundles_post_ra>
// kernel: tpu_custom_call.1
= control target key start
LH: loop header
LB: loop body
LE: loop exit
PB: predicated region body
PF: predicated region fallthrough
CT: control target
= control target key end

     0   :  { %7 = vsyncpa [#allocation3], 0  ;;  %s343_s0 = inlined_call_operand.hbm [shape: f32[16,64], index: 0, kind: input, shape index: {}]   ;;  %s344_s1 = inlined_call_operand.hbm [shape: f32[64,512], index: 1, kind: input, shape index: {}]   ;;  %s345_s2 = inlined_call_operand.hbm [shape: f32[16,512], index: 2, kind: output, shape index: {}]  }
   0x1   :  { %8 = vsyncpa [#allocation6], 0 }
   0x2   :  { %9 = vsyncpa [#allocation4], 0  ;;  %s14_s11 = sshll.u32 %s343_s0, 4  ;;  %s298_s12 = smov [#allocation2]   ;;  %s15_s11 = int_to_ptr.hbm [resolvable:$true] %s14_s11 }
   0x3   :  { %s16_s13 = sshll.u32 %s298_s12, 4  ;;  %s27_s16 = sshll.u32 %s344_s1, 4  ;;  %s17_s13 = int_to_ptr.vmem [resolvable:$true] %s16_s13  ;;  %s28_s16 = int_to_ptr.hbm [resolvable:$true] %s27_s16 }
   0x4   :  { %s299_s17 = smov 128   ;;  %s300_s18 = smov 8  }
   0x5   :  { %22 = dma.hbm_to_vmem [thread:$0]  %s15_s11, 256, %s17_s13, [#allocation3], %s299_s17, %s299_s17, %s300_s18  }
   0x6   :  { %s301_s19 = smov [#allocation5]   ;;  %s302_s21 = smov 512  }
   0x7   :  { %s29_s20 = sshll.u32 %s301_s19, 4  ;;  %s303_s22 = smov 32   ;;  %s30_s20 = int_to_ptr.vmem [resolvable:$true] %s29_s20 }
   0x8   :  { %35 = dma.hbm_to_vmem [thread:$0]  %s28_s16, 4096, %s30_s20, [#allocation6], %s302_s21, %s302_s21, %s303_s22  }
   0x9   :  { %292 = dma.done.wait [#allocation3], 256  }
   0xa   :  { %293 = vsyncadd [#allocation3], 4294967040 }
   0xb   :  { %294 = dma.done.wait [#allocation6], 4096  }
   0xc   :  { %295 = vsyncadd [#allocation6], 4294963200  ;;  %v74_v0 = vld [vmem:[#allocation5 + $0xf0] sm:$0xff]  ;;  %v75_v1 = vld [vmem:[#allocation5 + $0xf8] sm:$0xff]  ;;  %vm78_vm0 = vcmask 523264   ;;  %s304_s0 = smov [#allocation7]  }
   0xd   :  { %v70_v2 = vld [vmem:[#allocation5 + $0xd0] sm:$0xff]  ;;  %139 = vmatpush.msra.mxu2 %v74_v0  ;;  %162 = vmatpush.msra.mxu3 %v75_v1  ;;  %v71_v3 = vld [vmem:[#allocation5 + $0xd8] sm:$0xff]  ;;  %v72_v6 = vld [vmem:[#allocation5 + $0xe0] sm:$0xff]  ;;  %s189_s1 = sshll.u32 %s304_s0, 4  ;;  %s191_s25 = sshll.u32 %s345_s2, 4  ;;  %s190_s1 = int_to_ptr.vmem [resolvable:$true] %s189_s1  ;;  %s192_s25 = int_to_ptr.hbm [resolvable:$true] %s191_s25 }
   0xe   :  { %v66_v4 = vld [vmem:[#allocation5 + $0xb0] sm:$0xff]  ;;  %v67_v5 = vld [vmem:[#allocation5 + $0xb8] sm:$0xff]  ;;  %v73_v7 = vld [vmem:[#allocation5 + $0xe8] sm:$0xff]  ;;  %93 = vmatpush.msra.mxu0 %v72_v6 }
   0xf   :  { %140 = vmatpush.msra.mxu2 %v70_v2  ;;  %163 = vmatpush.msra.mxu3 %v71_v3  ;;  %v68_v8 = vld [vmem:[#allocation5 + $0xc0] sm:$0xff]  ;;  %v69_v9 = vld [vmem:[#allocation5 + $0xc8] sm:$0xff]  ;;  %v62_v10 = vld [vmem:[#allocation5 + $0x90] sm:$0xff] }
  0x10   :  { %116 = vmatpush.msra.mxu1 %v73_v7  ;;  %v63_v11 = vld [vmem:[#allocation5 + $0x98] sm:$0xff]  ;;  %v64_v12 = vld [vmem:[#allocation5 + $0xa0] sm:$0xff]  ;;  %v65_v13 = vld [vmem:[#allocation5 + $0xa8] sm:$0xff]  ;;  %94 = vmatpush.msra.mxu0 %v68_v8 }
  0x11   :  { %141 = vmatpush.msra.mxu2 %v66_v4  ;;  %164 = vmatpush.msra.mxu3 %v67_v5  ;;  %v58_v14 = vld [vmem:[#allocation5 + $0x70] sm:$0xff]  ;;  %v59_v15 = vld [vmem:[#allocation5 + $0x78] sm:$0xff]  ;;  %v60_v16 = vld [vmem:[#allocation5 + $0x80] sm:$0xff] }
  0x12   :  { %117 = vmatpush.msra.mxu1 %v69_v9  ;;  %v61_v17 = vld [vmem:[#allocation5 + $0x88] sm:$0xff]  ;;  %95 = vmatpush.msra.mxu0 %v64_v12  ;;  %v54_v18 = vld [vmem:[#allocation5 + $0x50] sm:$0xff]  ;;  %v55_v19 = vld [vmem:[#allocation5 + $0x58] sm:$0xff] }
  0x13   :  { %142 = vmatpush.msra.mxu2 %v62_v10  ;;  %165 = vmatpush.msra.mxu3 %v63_v11  ;;  %v56_v20 = vld [vmem:[#allocation5 + $0x60] sm:$0xff]  ;;  %v57_v21 = vld [vmem:[#allocation5 + $0x68] sm:$0xff]  ;;  %v50_v22 = vld [vmem:[#allocation5 + $0x30] sm:$0xff] }
  0x14   :  { %118 = vmatpush.msra.mxu1 %v65_v13  ;;  %96 = vmatpush.msra.mxu0 %v60_v16  ;;  %v51_v23 = vld [vmem:[#allocation5 + $0x38] sm:$0xff]  ;;  %v52_v24 = vld [vmem:[#allocation5 + $0x40] sm:$0xff]  ;;  %v53_v25 = vld [vmem:[#allocation5 + $0x48] sm:$0xff] }
  0x15   :  { %143 = vmatpush.msra.mxu2 %v58_v14  ;;  %166 = vmatpush.msra.mxu3 %v59_v15  ;;  %v46_v26 = vld [vmem:[#allocation5 + $0x10] sm:$0xff]  ;;  %v47_v27 = vld [vmem:[#allocation5 + $0x18] sm:$0xff]  ;;  %v48_v29 = vld [vmem:[#allocation5 + $0x20] sm:$0xff] }
  0x16   :  { %119 = vmatpush.msra.mxu1 %v61_v17  ;;  %97 = vmatpush.msra.mxu0 %v56_v20  ;;  %v76_v28 = vld [vmem:[#allocation2] sm:$0xff]  ;;  %v49_v30 = vld [vmem:[#allocation5 + $0x28] sm:$0xff]  ;;  %v44_v31 = vld [vmem:[#allocation5] sm:$0xff] }
  0x17   :  { %144 = vmatpush.msra.mxu2 %v54_v18  ;;  %167 = vmatpush.msra.mxu3 %v55_v19  ;;  %v45_v32 = vld [vmem:[#allocation5 + $0x8] sm:$0xff]  ;;  %v77_v33 = vld [vmem:[#allocation2 + $0x8] sm:$0xff] }
  0x18   :  { %120 = vmatpush.msra.mxu1 %v57_v21  ;;  %98 = vmatpush.msra.mxu0 %v52_v24 }
  0x19   :  { %145 = vmatpush.msra.mxu2 %v50_v22  ;;  %168 = vmatpush.msra.mxu3 %v51_v23 }
  0x1a   :  { %121 = vmatpush.msra.mxu1 %v53_v25  ;;  %99 = vmatpush.msra.mxu0 %v48_v29 }
  0x1b   :  { %146 = vmatpush.msra.mxu2 %v46_v26  ;;  %169 = vmatpush.msra.mxu3 %v47_v27 }
  0x1c   :  { %209 = vmatmul.msk.f32.vlgmr.msra.gmra.mxu2 %vm78_vm0, %v76_v28  ;;  %211 = vmatmul.msk.f32.vlgmr.msra.gmra.mxu3 %vm78_vm0, %v76_v28 }
  0x1d   :  { %122 = vmatpush.msra.mxu1 %v49_v30  ;;  %100 = vmatpush.msra.mxu0 %v44_v31 }
  0x1e   :  { %205 = vmatmul.msk.f32.vlgmr.msra.gmra.mxu0 %vm78_vm0, %v76_v28 }
  0x1f   :  { %123 = vmatpush.msra.mxu1 %v45_v32 }
  0x20   :  { %207 = vmatmul.msk.f32.vlgmr.msra.gmra.mxu1 %vm78_vm0, %v76_v28 }
  0x24   :  { %210 = vmatmul.msk.f32.gmra.mxu2 %vm78_vm0, %v77_v33  ;;  %212 = vmatmul.msk.f32.gmra.mxu3 %vm78_vm0, %v77_v33 }
  0x26   :  { %206 = vmatmul.msk.f32.gmra.mxu0 %vm78_vm0, %v77_v33 }
  0x28   :  { %208 = vmatmul.msk.f32.gmra.mxu1 %vm78_vm0, %v77_v33 }
  0x9b   :  { %v102_v34 = vpop.f32.mrf.mxu0 }
  0x9c   :  { %177 = vst [vmem:[#allocation7] sm:$0xff] %v102_v34 }
  0x9d   :  { %v125_v35 = vpop.f32.mrf.mxu1 }
  0x9e   :  { %178 = vst [vmem:[#allocation7 + $0x8] sm:$0xff] %v125_v35 }
  0x9f   :  { %v148_v36 = vpop.f32.mrf.mxu2  ;;  %v171_v37 = vpop.f32.mrf.mxu3 }
  0xa0   :  { %179 = vst [vmem:[#allocation7 + $0x10] sm:$0xff] %v148_v36 }
  0xa1   :  { %180 = vst [vmem:[#allocation7 + $0x18] sm:$0xff] %v171_v37 }
  0xa3   :  { %v105_v38 = vpop.f32.mrf.mxu0 }
  0xa4   :  { %181 = vst [vmem:[#allocation7 + $0x20] sm:$0xff] %v105_v38 }
  0xa5   :  { %v128_v39 = vpop.f32.mrf.mxu1 }
  0xa6   :  { %182 = vst [vmem:[#allocation7 + $0x28] sm:$0xff] %v128_v39 }
  0xa7   :  { %v151_v40 = vpop.f32.mrf.mxu2  ;;  %v174_v41 = vpop.f32.mrf.mxu3 }
  0xa8   :  { %183 = vst [vmem:[#allocation7 + $0x30] sm:$0xff] %v151_v40 }
  0xa9   :  { %184 = vst [vmem:[#allocation7 + $0x38] sm:$0xff] %v174_v41 }
  0xaa   :  { %197 = dma.vmem_to_hbm [thread:$0]  %s190_s1, 1024, %s192_s25, [#allocation4], %s302_s21, %s302_s21, %s303_s22  }
  0xab   :  { %296 = dma.done.wait [#allocation4], 1024  }
  0xac   :  { %297 = vsyncadd [#allocation4], 4294966272 }
  0xad   :  { %202 = vsyncpa [#allocation3], 1 }
  0xae   :  { %203 = vsyncpa [#allocation6], 1 }
  0xaf   :  { %204 = vsyncpa [#allocation4], 1 }

</bundles_post_ra>
